<compile_context>
chip_gen: v5e
topology: v5e:2x2
jax: 0.10.0
libtpu: 0.0.40
codegen_flags: <defaults>
</compile_context>

<pallas_src>
import jax
import jax.numpy as jnp
from jax import lax
from jax.experimental import pallas as pl
from jax.experimental.pallas import tpu as pltpu

# ---- model hyper-params (small, consistent with the module's forward) ----
VOCAB = 128            # nn.Embedding vocab size (synthetic; real model uses 120k)
EMBED = 128            # embedding_length (module uses 300; 128 keeps lanes full)
SEQ = 16               # sentence length
BATCH = 4
OUT_CHANNELS = 3       # parameter.get('out_channels', 3)
KERNEL_HEIGHTS = (2, 3, 5)
KH_MAX = max(KERNEL_HEIGHTS)
OUT_SIZE = 1           # parameter['tot_class']

NF = len(KERNEL_HEIGHTS) * OUT_CHANNELS   # 9 pooled (branch, channel) features
NP = 128                                  # lane-padded feature width
BS = BATCH * SEQ                          # flattened (batch * seq) rows


def textcnn_kernel(ids_ref, emb_ref, wbig_ref, bias_ref, mask_ref, wl_ref, bl_ref,
                   out_ref):
    """Whole batch in one program: embed -> fused conv -> relu -> maxpool -> linear."""
    # --- embedding lookup fused as a one-hot matmul (MXU) ---
    ids = ids_ref[...]                                            # (B*S, 1) int32
    vocab_iota = lax.broadcasted_iota(jnp.int32, (BS, VOCAB), 1)  # (B*S, V)
    onehot = (ids == vocab_iota).astype(jnp.float32)
    x = jnp.dot(onehot, emb_ref[...],
                preferred_element_type=jnp.float32)               # (B*S, E)

    # --- im2col over the tap axis: KH_MAX shifted copies concatenated along lanes ---
    cols = [x]
    for d in range(1, KH_MAX):
        shifted = jnp.concatenate(
            [x[d:, :], jnp.zeros((d, EMBED), jnp.float32)], axis=0)
        cols.append(shifted)
    x_cat = jnp.concatenate(cols, axis=1)                         # (B*S, KH_MAX*E)

    # --- all conv branches / taps / channels in one MXU pass ---
    conv = jnp.dot(x_cat, wbig_ref[...],
                   preferred_element_type=jnp.float32)            # (B*S, NP); cols < NF live
    act = jnp.maximum(conv + bias_ref[...], 0.0) * mask_ref[...]  # ReLU + mask invalid t

    # --- global max-pool over the sequence axis, per batch row (lane-dense) ---
    pooled = jnp.concatenate(
        [jnp.max(act[b * SEQ:(b + 1) * SEQ, :], axis=0, keepdims=True)
         for b in range(BATCH)], axis=0)                          # (B, NP)

    # --- dropout = identity at inference; final Linear as VPU multiply + lane-reduce ---
    logits = jnp.sum(pooled * wl_ref[...], axis=1, keepdims=True) + bl_ref[...]
    out_ref[...] = logits                                         # (B, OUT_SIZE)


def pack_params(params):
    """Host-side packing of torch-layout weights into lane-dense kernel operands."""
    w_big = jnp.zeros((KH_MAX * EMBED, NP), jnp.float32)
    bias_row = jnp.zeros((1, NP), jnp.float32)
    wl_row = jnp.zeros((1, NP), jnp.float32)
    valid = jnp.zeros((BS, NP), jnp.float32)
    t_in_seq = jnp.arange(BS, dtype=jnp.int32) % SEQ
    for g, kh in enumerate(KERNEL_HEIGHTS):
        w = params[f"w{kh}"]                          # (C, kh, E)  (torch, in_ch squeezed)
        b = params[f"b{kh}"]                          # (C,)
        col_valid = (t_in_seq < (SEQ - kh + 1)).astype(jnp.float32)
        for c in range(OUT_CHANNELS):
            j = g * OUT_CHANNELS + c
            for d in range(kh):
                w_big = w_big.at[d * EMBED:(d + 1) * EMBED, j].set(w[c, d, :])
            bias_row = bias_row.at[0, j].set(b[c])
            valid = valid.at[:, j].set(col_valid)
    wl_row = wl_row.at[0, :NF].set(params["wl"][0])
    return {
        "emb": params["embedding"].astype(jnp.float32),
        "w_big": w_big,
        "bias_row": bias_row,
        "mask": valid,
        "wl_row": wl_row,
        "bl": params["bl"].reshape(1, OUT_SIZE).astype(jnp.float32),
    }


def textcnn_forward(token_ids, packed):
    """token_ids: (B, S) int32 -> logits (B, OUT_SIZE) float32."""
    ids2d = token_ids.reshape(BS, 1).astype(jnp.int32)

    def full(shape):
        zeros = (0,) * len(shape)
        return pl.BlockSpec(shape, lambda i, z=zeros: z)

    operands = (ids2d, packed["emb"], packed["w_big"], packed["bias_row"],
                packed["mask"], packed["wl_row"], packed["bl"])
    in_specs = [full(op.shape) for op in operands]

    return pl.pallas_call(
        textcnn_kernel,
        out_shape=jax.ShapeDtypeStruct((BATCH, OUT_SIZE), jnp.float32),
        grid_spec=pltpu.PrefetchScalarGridSpec(
            num_scalar_prefetch=0,
            grid=(1,),                                 # whole problem fits VMEM everywhere
            in_specs=in_specs,
            out_specs=pl.BlockSpec((BATCH, OUT_SIZE), lambda i: (0, 0)),
        ),
        compiler_params=pltpu.CompilerParams(
            dimension_semantics=("arbitrary",)),
    )(*operands)


def init_params(key):
    """Deterministic synthetic weights matching the module's shapes."""
    ks = jax.random.split(key, 9)
    params = {"embedding": jax.random.normal(ks[0], (VOCAB, EMBED), jnp.float32) * 0.5}
    # Conv2d weights: torch shape (C_out, 1, kh, E) -> stored as (C_out, kh, E)
    for i, kh in enumerate(KERNEL_HEIGHTS):
        params[f"w{kh}"] = jax.random.normal(
            ks[1 + 2 * i], (OUT_CHANNELS, kh, EMBED), jnp.float32) * 0.1
        params[f"b{kh}"] = jax.random.normal(
            ks[2 + 2 * i], (OUT_CHANNELS,), jnp.float32) * 0.1
    # Linear(3*C -> 1): torch weight (out, in)
    params["wl"] = jax.random.normal(ks[7], (OUT_SIZE, NF), jnp.float32) * 0.1
    params["bl"] = jax.random.normal(ks[8], (OUT_SIZE,), jnp.float32) * 0.1
    return params


def reference_forward(token_ids, params):
    """Plain-JAX replica of TextCNN.forward (eval mode) for correctness check."""
    x = jnp.take(params["embedding"], token_ids, axis=0)          # (B, S, E)
    feats = []
    for kh in KERNEL_HEIGHTS:
        w = params[f"w{kh}"]                                      # (C, kh, E)
        b = params[f"b{kh}"]                                      # (C,)
        L = SEQ - kh + 1
        windows = jnp.stack([x[:, t:t + kh, :] for t in range(L)], axis=1)  # (B,L,kh,E)
        conv = jnp.einsum("blke,cke->blc", windows, w) + b
        feats.append(jnp.max(jnp.maximum(conv, 0.0), axis=1))     # (B, C)
    f = jnp.concatenate(feats, axis=1)                            # (B, NF)
    return f @ params["wl"].T + params["bl"]


if __name__ == "__main__":
    key = jax.random.PRNGKey(0)
    pkey, ikey = jax.random.split(key)
    params = init_params(pkey)
    token_ids = jax.random.randint(ikey, (BATCH, SEQ), 0, VOCAB, dtype=jnp.int32)

    packed = pack_params(params)
    logits = jax.block_until_ready(textcnn_forward(token_ids, packed))

    ref = jax.block_until_ready(reference_forward(token_ids, params))
    assert logits.shape == (BATCH, OUT_SIZE)
    assert jnp.allclose(logits, ref, atol=1e-4, rtol=1e-4), (logits, ref)
    print("KERNEL_OK")
</pallas_src>

<mosaic_0001>
module attributes {stable_mosaic.version = 11 : i64} {
  func.func @textcnn_kernel(%arg0: i32, %arg1: memref<64x1xi32, #tpu.memory_space<vmem>>, %arg2: memref<128x128xf32, #tpu.memory_space<vmem>>, %arg3: memref<640x128xf32, #tpu.memory_space<vmem>>, %arg4: memref<1x128xf32, #tpu.memory_space<vmem>>, %arg5: memref<64x128xf32, #tpu.memory_space<vmem>>, %arg6: memref<1x128xf32, #tpu.memory_space<vmem>>, %arg7: memref<1x1xf32, #tpu.memory_space<vmem>>, %arg8: memref<4x1xf32, #tpu.memory_space<vmem>>) attributes {dimension_semantics = [#tpu.dimension_semantics<arbitrary>], iteration_bounds = array<i64: 1>, scalar_prefetch = 0 : i64, scratch_operands = 0 : i64, tpu.core_type = #tpu.core_type<tc>, window_params = [{pipeline_mode = #tpu.pipeline_mode<synchronous>, transform_indices = @transform_0, window_bounds = array<i64: 64, 1>}, {pipeline_mode = #tpu.pipeline_mode<synchronous>, transform_indices = @transform_1, window_bounds = array<i64: 128, 128>}, {pipeline_mode = #tpu.pipeline_mode<synchronous>, transform_indices = @transform_2, window_bounds = array<i64: 640, 128>}, {pipeline_mode = #tpu.pipeline_mode<synchronous>, transform_indices = @transform_3, window_bounds = array<i64: 1, 128>}, {pipeline_mode = #tpu.pipeline_mode<synchronous>, transform_indices = @transform_4, window_bounds = array<i64: 64, 128>}, {pipeline_mode = #tpu.pipeline_mode<synchronous>, transform_indices = @transform_5, window_bounds = array<i64: 1, 128>}, {pipeline_mode = #tpu.pipeline_mode<synchronous>, transform_indices = @transform_6, window_bounds = array<i64: 1, 1>}, {pipeline_mode = #tpu.pipeline_mode<synchronous>, transform_indices = @transform_7, window_bounds = array<i64: 4, 1>}]} {
    %c0 = arith.constant 0 : index
    %c0_0 = arith.constant 0 : index
    %0 = vector.load %arg1[%c0, %c0_0] : memref<64x1xi32, #tpu.memory_space<vmem>>, vector<64x1xi32>
    %1 = tpu.iota {dimensions = array<i32: 1>} : vector<64x128xi32>
    %2 = vector.broadcast %0 : vector<64x1xi32> to vector<64x128xi32>
    %3 = arith.cmpi eq, %2, %1 : vector<64x128xi32>
    %4 = arith.extui %3 : vector<64x128xi1> to vector<64x128xi32>
    %5 = arith.sitofp %4 : vector<64x128xi32> to vector<64x128xf32>
    %c0_1 = arith.constant 0 : index
    %c0_2 = arith.constant 0 : index
    %6 = vector.load %arg2[%c0_1, %c0_2] : memref<128x128xf32, #tpu.memory_space<vmem>>, vector<128x128xf32>
    %cst = arith.constant dense<0.000000e+00> : vector<64x128xf32>
    %7 = tpu.matmul %5, %6, %cst {dimension_numbers = #tpu.dot_dimension_numbers<[1], [0], [0], [1], [0, 0, 1, 1], [], []>} : vector<64x128xf32>, vector<128x128xf32>, vector<64x128xf32> -> vector<64x128xf32>
    %8 = vector.extract_strided_slice %7 {offsets = [1, 0], sizes = [63, 128], strides = [1, 1]} : vector<64x128xf32> to vector<63x128xf32>
    %cst_3 = arith.constant 0.000000e+00 : f32
    %9 = vector.broadcast %cst_3 : f32 to vector<1x128xf32>
    %10 = tpu.concatenate %8, %9 in 0 : vector<63x128xf32>, vector<1x128xf32> -> vector<64x128xf32>
    %11 = vector.extract_strided_slice %7 {offsets = [2, 0], sizes = [62, 128], strides = [1, 1]} : vector<64x128xf32> to vector<62x128xf32>
    %cst_4 = arith.constant 0.000000e+00 : f32
    %12 = vector.broadcast %cst_4 : f32 to vector<2x128xf32>
    %13 = tpu.concatenate %11, %12 in 0 : vector<62x128xf32>, vector<2x128xf32> -> vector<64x128xf32>
    %14 = vector.extract_strided_slice %7 {offsets = [3, 0], sizes = [61, 128], strides = [1, 1]} : vector<64x128xf32> to vector<61x128xf32>
    %cst_5 = arith.constant 0.000000e+00 : f32
    %15 = vector.broadcast %cst_5 : f32 to vector<3x128xf32>
    %16 = tpu.concatenate %14, %15 in 0 : vector<61x128xf32>, vector<3x128xf32> -> vector<64x128xf32>
    %17 = vector.extract_strided_slice %7 {offsets = [4, 0], sizes = [60, 128], strides = [1, 1]} : vector<64x128xf32> to vector<60x128xf32>
    %cst_6 = arith.constant 0.000000e+00 : f32
    %18 = vector.broadcast %cst_6 : f32 to vector<4x128xf32>
    %19 = tpu.concatenate %17, %18 in 0 : vector<60x128xf32>, vector<4x128xf32> -> vector<64x128xf32>
    %20 = tpu.concatenate %7, %10, %13, %16, %19 in 1 : vector<64x128xf32>, vector<64x128xf32>, vector<64x128xf32>, vector<64x128xf32>, vector<64x128xf32> -> vector<64x640xf32>
    %c0_7 = arith.constant 0 : index
    %c0_8 = arith.constant 0 : index
    %21 = vector.load %arg3[%c0_7, %c0_8] : memref<640x128xf32, #tpu.memory_space<vmem>>, vector<640x128xf32>
    %cst_9 = arith.constant dense<0.000000e+00> : vector<64x128xf32>
    %22 = tpu.matmul %20, %21, %cst_9 {dimension_numbers = #tpu.dot_dimension_numbers<[1], [0], [0], [1], [0, 0, 1, 1], [], []>} : vector<64x640xf32>, vector<640x128xf32>, vector<64x128xf32> -> vector<64x128xf32>
    %c0_10 = arith.constant 0 : index
    %c0_11 = arith.constant 0 : index
    %23 = vector.load %arg4[%c0_10, %c0_11] : memref<1x128xf32, #tpu.memory_space<vmem>>, vector<1x128xf32>
    %24 = vector.broadcast %23 : vector<1x128xf32> to vector<64x128xf32>
    %25 = arith.addf %22, %24 : vector<64x128xf32>
    %cst_12 = arith.constant 0.000000e+00 : f32
    %26 = vector.broadcast %cst_12 : f32 to vector<64x128xf32>
    %27 = arith.maximumf %25, %26 : vector<64x128xf32>
    %c0_13 = arith.constant 0 : index
    %c0_14 = arith.constant 0 : index
    %28 = vector.load %arg5[%c0_13, %c0_14] : memref<64x128xf32, #tpu.memory_space<vmem>>, vector<64x128xf32>
    %29 = arith.mulf %27, %28 : vector<64x128xf32>
    %30 = vector.extract_strided_slice %29 {offsets = [0, 0], sizes = [16, 128], strides = [1, 1]} : vector<64x128xf32> to vector<16x128xf32>
    %cst_15 = arith.constant dense<0xFF800000> : vector<128xf32>
    %31 = vector.multi_reduction <maximumf>, %30, %cst_15 [0] : vector<16x128xf32> to vector<128xf32>
    %32 = vector.shape_cast %31 : vector<128xf32> to vector<1x128xf32>
    %33 = vector.extract_strided_slice %29 {offsets = [16, 0], sizes = [16, 128], strides = [1, 1]} : vector<64x128xf32> to vector<16x128xf32>
    %cst_16 = arith.constant dense<0xFF800000> : vector<128xf32>
    %34 = vector.multi_reduction <maximumf>, %33, %cst_16 [0] : vector<16x128xf32> to vector<128xf32>
    %35 = vector.shape_cast %34 : vector<128xf32> to vector<1x128xf32>
    %36 = vector.extract_strided_slice %29 {offsets = [32, 0], sizes = [16, 128], strides = [1, 1]} : vector<64x128xf32> to vector<16x128xf32>
    %cst_17 = arith.constant dense<0xFF800000> : vector<128xf32>
    %37 = vector.multi_reduction <maximumf>, %36, %cst_17 [0] : vector<16x128xf32> to vector<128xf32>
    %38 = vector.shape_cast %37 : vector<128xf32> to vector<1x128xf32>
    %39 = vector.extract_strided_slice %29 {offsets = [48, 0], sizes = [16, 128], strides = [1, 1]} : vector<64x128xf32> to vector<16x128xf32>
    %cst_18 = arith.constant dense<0xFF800000> : vector<128xf32>
    %40 = vector.multi_reduction <maximumf>, %39, %cst_18 [0] : vector<16x128xf32> to vector<128xf32>
    %41 = vector.shape_cast %40 : vector<128xf32> to vector<1x128xf32>
    %42 = tpu.concatenate %32, %35, %38, %41 in 0 : vector<1x128xf32>, vector<1x128xf32>, vector<1x128xf32>, vector<1x128xf32> -> vector<4x128xf32>
    %c0_19 = arith.constant 0 : index
    %c0_20 = arith.constant 0 : index
    %43 = vector.load %arg6[%c0_19, %c0_20] : memref<1x128xf32, #tpu.memory_space<vmem>>, vector<1x128xf32>
    %44 = vector.broadcast %43 : vector<1x128xf32> to vector<4x128xf32>
    %45 = arith.mulf %42, %44 : vector<4x128xf32>
    %cst_21 = arith.constant dense<0.000000e+00> : vector<4xf32>
    %46 = vector.multi_reduction <add>, %45, %cst_21 [1] : vector<4x128xf32> to vector<4xf32>
    %47 = vector.shape_cast %46 : vector<4xf32> to vector<4x1xf32>
    %c0_22 = arith.constant 0 : index
    %c0_23 = arith.constant 0 : index
    %48 = vector.load %arg7[%c0_22, %c0_23] : memref<1x1xf32, #tpu.memory_space<vmem>>, vector<1x1xf32>
    %49 = vector.broadcast %48 : vector<1x1xf32> to vector<4x1xf32>
    %50 = arith.addf %47, %49 : vector<4x1xf32>
    %c0_24 = arith.constant 0 : index
    %c0_25 = arith.constant 0 : index
    %51 = vector.load %arg8[%c0_24, %c0_25] : memref<4x1xf32, #tpu.memory_space<vmem>>, vector<4x1xf32>
    tpu.vector_store %arg8[%c0_24, %c0_25], %50 {strides = array<i32>} : memref<4x1xf32, #tpu.memory_space<vmem>>, vector<4x1xf32>,
    return
  }
  func.func @transform_0(%arg0: i32) -> (i32, i32) {
    %c0_i32 = arith.constant 0 : i32
    %c0_i32_0 = arith.constant 0 : i32
    %c0_i32_1 = arith.constant 0 : i32
    return %c0_i32, %c0_i32_0 : i32, i32
  }
  func.func @transform_1(%arg0: i32) -> (i32, i32) {
    %c0_i32 = arith.constant 0 : i32
    %c0_i32_0 = arith.constant 0 : i32
    %c0_i32_1 = arith.constant 0 : i32
    return %c0_i32, %c0_i32_0 : i32, i32
  }
  func.func @transform_2(%arg0: i32) -> (i32, i32) {
    %c0_i32 = arith.constant 0 : i32
    %c0_i32_0 = arith.constant 0 : i32
    %c0_i32_1 = arith.constant 0 : i32
    return %c0_i32, %c0_i32_0 : i32, i32
  }
  func.func @transform_3(%arg0: i32) -> (i32, i32) {
    %c0_i32 = arith.constant 0 : i32
    %c0_i32_0 = arith.constant 0 : i32
    %c0_i32_1 = arith.constant 0 : i32
    return %c0_i32, %c0_i32_0 : i32, i32
  }
  func.func @transform_4(%arg0: i32) -> (i32, i32) {
    %c0_i32 = arith.constant 0 : i32
    %c0_i32_0 = arith.constant 0 : i32
    %c0_i32_1 = arith.constant 0 : i32
    return %c0_i32, %c0_i32_0 : i32, i32
  }
  func.func @transform_5(%arg0: i32) -> (i32, i32) {
    %c0_i32 = arith.constant 0 : i32
    %c0_i32_0 = arith.constant 0 : i32
    %c0_i32_1 = arith.constant 0 : i32
    return %c0_i32, %c0_i32_0 : i32, i32
  }
  func.func @transform_6(%arg0: i32) -> (i32, i32) {
    %c0_i32 = arith.constant 0 : i32
    %c0_i32_0 = arith.constant 0 : i32
    %c0_i32_1 = arith.constant 0 : i32
    return %c0_i32, %c0_i32_0 : i32, i32
  }
  func.func @transform_7(%arg0: i32) -> (i32, i32) {
    %c0_i32 = arith.constant 0 : i32
    %c0_i32_0 = arith.constant 0 : i32
    %c0_i32_1 = arith.constant 0 : i32
    return %c0_i32, %c0_i32_0 : i32, i32
  }
}

</mosaic_0001>

<bundles_post_ra>
// kernel: tpu_custom_call.1
= control target key start
LH: loop header
LB: loop body
LE: loop exit
PB: predicated region body
PF: predicated region fallthrough
CT: control target
= control target key end

     0   :  { %s984_s0 = inlined_call_operand.vmem [shape: s32[64,1], index: 0, kind: input, shape index: {}]   ;;  %s985_s1 = inlined_call_operand.hbm [shape: f32[128,128], index: 1, kind: input, shape index: {}]   ;;  %s986_s2 = inlined_call_operand.hbm [shape: f32[640,128], index: 2, kind: input, shape index: {}]   ;;  %s987_s3 = inlined_call_operand.vmem [shape: f32[1,128], index: 3, kind: input, shape index: {}]   ;;  %s988_s4 = inlined_call_operand.vmem [shape: f32[64,128], index: 4, kind: input, shape index: {}]   ;;  %s989_s5 = inlined_call_operand.vmem [shape: f32[1,128], index: 5, kind: input, shape index: {}]   ;;  %s990_s6 = inlined_call_operand.<no memory space> [shape: f32[1,1], index: 6, kind: input, shape index: {}]   ;;  %s991_s7 = inlined_call_operand.vmem [shape: f32[4,1], index: 7, kind: output, shape index: {}]  }
   0x1   :  { %v12_v0 = vstv %s990_s6 }
   0x2   :  { %13 = vst [vmem:[#allocation2] sm:$0x1] %v12_v0 }
   0x3   :  { %14 = vsyncpa [#allocation4], 0  ;;  %s22_s28 = sshll.u32 %s985_s1, 4  ;;  %s23_s28 = int_to_ptr.hbm [resolvable:$true] %s22_s28 }
   0x4   :  { %15 = vsyncpa [#allocation6], 0  ;;  %s767_s29 = smov [#allocation3]   ;;  %s35_s10 = sshll.u32 %s986_s2, 4  ;;  %s36_s10 = int_to_ptr.hbm [resolvable:$true] %s35_s10 }
   0x5   :  { %s24_s30 = sshll.u32 %s767_s29, 4  ;;  %s768_s11 = smov 128   ;;  %s25_s30 = int_to_ptr.vmem [resolvable:$true] %s24_s30 }
   0x6   :  { %s769_s12 = smov 8   ;;  %s770_s6 = smov [#allocation5]  }
   0x7   :  { %30 = dma.hbm_to_vmem [thread:$0]  %s23_s28, 2048, %s25_s30, [#allocation4], %s768_s11, %s768_s11, %s769_s12  }
   0x8   :  { %s37_s13 = sshll.u32 %s770_s6, 4  ;;  %s38_s13 = int_to_ptr.vmem [resolvable:$true] %s37_s13 }
   0x9   :  { %43 = dma.hbm_to_vmem [thread:$0]  %s36_s10, 10240, %s38_s13, [#allocation6], %s768_s11, %s768_s11, %s769_s12  }
   0xa   :  { %763 = dma.done.wait [#allocation4], 2048  }
   0xb   :  { %764 = vsyncadd [#allocation4], 4294965248 }
   0xc   :  { %765 = dma.done.wait [#allocation6], 10240  }
   0xd   :  { %766 = vsyncadd [#allocation6], 4294957056  ;;  %v771_v1 = vmov 0   ;;  %v64_v2 = vld [vmem:[%s984_s0 + $0x20] sm:$0xff]  ;;  %v61_v4 = vld [vmem:[%s984_s0 + $0x8] sm:$0xff]  ;;  %v68_v26 = vlaneseq  ;;  %v772_v41 = vmov 1.0  }
   0xe   :  { %710 = vset.pattern.permute.xlu1 %v771_v1  ;;  %709 = vset.pattern.permute.xlu0 %v771_v1  ;;  %v60_v3 = vld [vmem:[%s984_s0] sm:$0xff]  ;;  %v132_v6 = vld [vmem:[#allocation3 + $0x70] sm:$0xff]  ;;  %v131_v7 = vld [vmem:[#allocation3 + $0x68] sm:$0xff]  ;;  %vm183_vm8 = vcmask 1046528   ;;  %vm233_vm9 = vcmask 1044480   ;;  %vm258_vm10 = vcmask 1043456  }
   0xf   :  { %711 = vset.pattern.permute.xlu2 %v771_v1  ;;  %83 = vperm.xlu0 %709, %v64_v2   ;;  %v133_v5 = vld [vmem:[#allocation3 + $0x78] sm:$0xff]  ;;  %v65_v8 = vld [vmem:[%s984_s0 + $0x28] sm:$0xff]  ;;  %v66_v9 = vld [vmem:[%s984_s0 + $0x30] sm:$0xff]  ;;  %v846_v32 = vand.u32 127, %v68_v26  ;;  %vm208_vm11 = vcmask 1045504   ;;  %vm624_vm12 = vcmask 1040384  }
  0x10   :  { %71 = vperm.xlu1 %710, %v60_v3   ;;  %74 = vperm.xlu2 %711, %v61_v4   ;;  %v130_v10 = vld [vmem:[#allocation3 + $0x60] sm:$0xff]  ;;  %v67_v11 = vld [vmem:[%s984_s0 + $0x38] sm:$0xff]  ;;  %v127_v14 = vld [vmem:[#allocation3 + $0x48] sm:$0xff]  ;;  %vm626_vm13 = vcmask 1041408   ;;  %vm628_vm14 = vcmask 1042432   ;;  %vm643_vm15 = vcmask 3072  }
  0x11   :  { %134 = vmatpush.msra.mxu0 %v133_v5  ;;  %671 = vmatpush.msra.mxu2 %v133_v5  ;;  %v129_v12 = vld [vmem:[#allocation3 + $0x58] sm:$0xff]  ;;  %v128_v13 = vld [vmem:[#allocation3 + $0x50] sm:$0xff]  ;;  %v126_v17 = vld [vmem:[#allocation3 + $0x40] sm:$0xff] }
  0x12   :  { %v62_v15 = vld [vmem:[%s984_s0 + $0x10] sm:$0xff]  ;;  %v63_v16 = vld [vmem:[%s984_s0 + $0x18] sm:$0xff]  ;;  %v122_v21 = vld [vmem:[#allocation3 + $0x20] sm:$0xff] }
  0x13   :  { %135 = vmatpush.msra.mxu0 %v132_v6  ;;  %672 = vmatpush.msra.mxu2 %v132_v6  ;;  %v125_v18 = vld [vmem:[#allocation3 + $0x38] sm:$0xff]  ;;  %v124_v19 = vld [vmem:[#allocation3 + $0x30] sm:$0xff]  ;;  %v123_v20 = vld [vmem:[#allocation3 + $0x28] sm:$0xff] }
  0x14   :  { %v121_v22 = vld [vmem:[#allocation3 + $0x18] sm:$0xff]  ;;  %v120_v23 = vld [vmem:[#allocation3 + $0x10] sm:$0xff]  ;;  %v119_v24 = vld [vmem:[#allocation3 + $0x8] sm:$0xff] }
  0x15   :  { %136 = vmatpush.msra.mxu0 %v131_v7  ;;  %673 = vmatpush.msra.mxu2 %v131_v7  ;;  %v118_v25 = vld [vmem:[#allocation3] sm:$0xff]  ;;  %v298_v27 = vld [vmem:[#allocation5 + $0x78] sm:$0xff]  ;;  %v297_v28 = vld [vmem:[#allocation5 + $0x70] sm:$0xff] }
  0x16   :  { %367 = vmatpush.msra.mxu1 %v298_v27  ;;  %687 = vmatpush.msra.mxu3 %v298_v27  ;;  %v296_v29 = vld [vmem:[#allocation5 + $0x68] sm:$0xff]  ;;  %v314_v30 = vld [vmem:[#allocation5 + $0xf8] sm:$0xff]  ;;  %v313_v33 = vld [vmem:[#allocation5 + $0xf0] sm:$0xff] }
  0x17   :  { %86 = vperm.xlu0 %709, %v65_v8   ;;  %137 = vmatpush.msra.mxu0 %v130_v10  ;;  %v346_v31 = vld [vmem:[#allocation5 + $0x1f8] sm:$0xff]  ;;  %v345_v34 = vld [vmem:[#allocation5 + $0x1f0] sm:$0xff]  ;;  %v295_v35 = vld [vmem:[#allocation5 + $0x60] sm:$0xff] }
  0x18   :  { %89 = vperm.xlu1 %710, %v66_v9   ;;  %674 = vmatpush.msra.mxu2 %v130_v10  ;;  %v294_v38 = vld [vmem:[#allocation5 + $0x58] sm:$0xff]  ;;  %v312_v39 = vld [vmem:[#allocation5 + $0xe8] sm:$0xff]  ;;  %v293_v42 = vld [vmem:[#allocation5 + $0x50] sm:$0xff] }
  0x19   :  { %92 = vperm.xlu2 %711, %v67_v11   ;;  %138 = vmatpush.msra.mxu0 %v129_v12  ;;  %v344_v40 = vld [vmem:[#allocation5 + $0x1e8] sm:$0xff]  ;;  %v311_v43 = vld [vmem:[#allocation5 + $0xe0] sm:$0xff]  ;;  %v310_v47 = vld [vmem:[#allocation5 + $0xd8] sm:$0xff] }
  0x1a   :  { %675 = vmatpush.msra.mxu2 %v129_v12  ;;  %368 = vmatpush.msra.mxu1 %v297_v28  ;;  %v343_v44 = vld [vmem:[#allocation5 + $0x1e0] sm:$0xff]  ;;  %v292_v46 = vld [vmem:[#allocation5 + $0x48] sm:$0xff]  ;;  %v342_v48 = vld [vmem:[#allocation5 + $0x1d8] sm:$0xff] }
  0x1b   :  { %139 = vmatpush.msra.mxu0 %v128_v13  ;;  %688 = vmatpush.msra.mxu3 %v297_v28  ;;  %v291_v49 = vld [vmem:[#allocation5 + $0x40] sm:$0xff]  ;;  %v290_v51 = vld [vmem:[#allocation5 + $0x38] sm:$0xff]  ;;  %v309_v52 = vld [vmem:[#allocation5 + $0xd0] sm:$0xff] }
  0x1c   :  { %676 = vmatpush.msra.mxu2 %v128_v13  ;;  %369 = vmatpush.msra.mxu1 %v296_v29  ;;  %v341_v53 = vld [vmem:[#allocation5 + $0x1d0] sm:$0xff]  ;;  %v308_v55 = vld [vmem:[#allocation5 + $0xc8] sm:$0xff]  ;;  %v307_v59 = vld [vmem:[#allocation5 + $0xc0] sm:$0xff] }
  0x1d   :  { %140 = vmatpush.msra.mxu0 %v127_v14  ;;  %689 = vmatpush.msra.mxu3 %v296_v29  ;;  %v289_v54 = vld [vmem:[#allocation5 + $0x30] sm:$0xff]  ;;  %v340_v56 = vld [vmem:[#allocation5 + $0x1c8] sm:$0xff]  ;;  %v339_v60 = vld [vmem:[#allocation5 + $0x1c0] sm:$0xff] }
  0x1e   :  { %677 = vmatpush.msra.mxu2 %v127_v14  ;;  %370 = vmatpush.msra.mxu1 %v295_v35  ;;  %v288_v58 = vld [vmem:[#allocation5 + $0x28] sm:$0xff]  ;;  %v287_v61 = vld [vmem:[#allocation5 + $0x20] sm:$0xff]  ;;  %v306_v62 = vld [vmem:[#allocation5 + $0xb8] sm:$0xff] }
  0x1f   :  { %77 = vperm.xlu0 %709, %v62_v15   ;;  %141 = vmatpush.msra.mxu0 %v126_v17  ;;  %v286_v0 = vld [vmem:[#allocation5 + $0x18] sm:$0xff]  ;;  %v305_v2 = vld [vmem:[#allocation5 + $0xb0] sm:$0xff]  ;;  %v284_v5 = vld [vmem:[#allocation5 + $0x8] sm:$0xff] }
  0x20   :  { %80 = vperm.xlu1 %710, %v63_v16   ;;  %678 = vmatpush.msra.mxu2 %v126_v17  ;;  %v338_v1 = vld [vmem:[#allocation5 + $0x1b8] sm:$0xff]  ;;  %v285_v3 = vld [vmem:[#allocation5 + $0x10] sm:$0xff]  ;;  %v283_v8 = vld [vmem:[#allocation5] sm:$0xff] }
  0x21   :  { %142 = vmatpush.msra.mxu0 %v125_v18  ;;  %690 = vmatpush.msra.mxu3 %v295_v35  ;;  %v337_v4 = vld [vmem:[#allocation5 + $0x1b0] sm:$0xff]  ;;  %v304_v9 = vld [vmem:[#allocation5 + $0xa8] sm:$0xff]  ;;  %v362_v11 = vld [vmem:[#allocation5 + $0x278] sm:$0xff] }
  0x22   :  { %679 = vmatpush.msra.mxu2 %v125_v18  ;;  %371 = vmatpush.msra.mxu1 %v294_v38  ;;  %v336_v10 = vld [vmem:[#allocation5 + $0x1a8] sm:$0xff]  ;;  %v303_v12 = vld [vmem:[#allocation5 + $0xa0] sm:$0xff]  ;;  %v361_v14 = vld [vmem:[#allocation5 + $0x270] sm:$0xff] }
  0x23   :  { %143 = vmatpush.msra.mxu0 %v124_v19  ;;  %691 = vmatpush.msra.mxu3 %v294_v38  ;;  %v335_v13 = vld [vmem:[#allocation5 + $0x1a0] sm:$0xff]  ;;  %v302_v15 = vld [vmem:[#allocation5 + $0x98] sm:$0xff]  ;;  %v360_v17 = vld [vmem:[#allocation5 + $0x268] sm:$0xff] }
  0x24   :  { %680 = vmatpush.msra.mxu2 %v124_v19  ;;  %372 = vmatpush.msra.mxu1 %v293_v42  ;;  %v334_v16 = vld [vmem:[#allocation5 + $0x198] sm:$0xff]  ;;  %v301_v18 = vld [vmem:[#allocation5 + $0x90] sm:$0xff]  ;;  %v299_v26 = vld [vmem:[#allocation5 + $0x80] sm:$0xff] }
  0x25   :  { %144 = vmatpush.msra.mxu0 %v123_v20  ;;  %692 = vmatpush.msra.mxu3 %v293_v42  ;;  %v333_v19 = vld [vmem:[#allocation5 + $0x190] sm:$0xff]  ;;  %v328_v27 = vld [vmem:[#allocation5 + $0x168] sm:$0xff]  ;;  %v331_v28 = vld [vmem:[#allocation5 + $0x180] sm:$0xff] }
  0x26   :  { %681 = vmatpush.msra.mxu2 %v123_v20  ;;  %373 = vmatpush.msra.mxu1 %v292_v46  ;;  %v330_v20 = vld [vmem:[#allocation5 + $0x178] sm:$0xff]  ;;  %v357_v29 = vld [vmem:[#allocation5 + $0x250] sm:$0xff]  ;;  %v323_v38 = vld [vmem:[#allocation5 + $0x140] sm:$0xff] }
  0x27   :  { %145 = vmatpush.msra.mxu0 %v122_v21  ;;  %693 = vmatpush.msra.mxu3 %v292_v46  ;;  %v354_v35 = vld [vmem:[#allocation5 + $0x238] sm:$0xff]  ;;  %v321_v42 = vld [vmem:[#allocation5 + $0x130] sm:$0xff]  ;;  %v319_v46 = vld [vmem:[#allocation5 + $0x120] sm:$0xff] }
  0x28   :  { %682 = vmatpush.msra.mxu2 %v122_v21  ;;  %374 = vmatpush.msra.mxu1 %v291_v49  ;;  %v359_v21 = vld [vmem:[#allocation5 + $0x260] sm:$0xff] }
  0x29   :  { %146 = vmatpush.msra.mxu0 %v121_v22  ;;  %694 = vmatpush.msra.mxu3 %v291_v49  ;;  %v347_v49 = vld [vmem:[#allocation5 + $0x200] sm:$0xff] }
  0x2a   :  { %683 = vmatpush.msra.mxu2 %v121_v22  ;;  %375 = vmatpush.msra.mxu1 %v290_v51  ;;  %v300_v22 = vld [vmem:[#allocation5 + $0x88] sm:$0xff] }
  0x2b   :  { %147 = vmatpush.msra.mxu0 %v120_v23  ;;  %695 = vmatpush.msra.mxu3 %v290_v51 }
  0x2c   :  { %684 = vmatpush.msra.mxu2 %v120_v23  ;;  %376 = vmatpush.msra.mxu1 %v289_v54  ;;  %v332_v23 = vld [vmem:[#allocation5 + $0x188] sm:$0xff] }
  0x2d   :  { %148 = vmatpush.msra.mxu0 %v119_v24  ;;  %696 = vmatpush.msra.mxu3 %v289_v54 }
  0x2e   :  { %685 = vmatpush.msra.mxu2 %v119_v24  ;;  %377 = vmatpush.msra.mxu1 %v288_v58  ;;  %v329_v24 = vld [vmem:[#allocation5 + $0x170] sm:$0xff] }
  0x2f   :  { %149 = vmatpush.msra.mxu0 %v118_v25  ;;  %697 = vmatpush.msra.mxu3 %v288_v58 }
  0x30   :  { %686 = vmatpush.msra.mxu2 %v118_v25  ;;  %378 = vmatpush.msra.mxu1 %v287_v61  ;;  %v358_v25 = vld [vmem:[#allocation5 + $0x258] sm:$0xff] }
  0x31   :  { %490 = vmatpush.msrb.mxu0 %v346_v31  ;;  %698 = vmatpush.msra.mxu3 %v287_v61  ;;  %v356_v31 = vld [vmem:[#allocation5 + $0x248] sm:$0xff] }
  0x32   :  { %408 = vmatpush.msrb.mxu2 %v314_v30  ;;  %379 = vmatpush.msra.mxu1 %v286_v0  ;;  %v327_v30 = vld [vmem:[#allocation5 + $0x160] sm:$0xff] }
  0x33   :  { %491 = vmatpush.msrb.mxu0 %v345_v34  ;;  %699 = vmatpush.msra.mxu3 %v286_v0  ;;  %v325_v34 = vld [vmem:[#allocation5 + $0x150] sm:$0xff] }
  0x34   :  { %409 = vmatpush.msrb.mxu2 %v313_v33  ;;  %380 = vmatpush.msra.mxu1 %v285_v3  ;;  %v355_v33 = vld [vmem:[#allocation5 + $0x240] sm:$0xff] }
  0x35   :  { %492 = vmatpush.msrb.mxu0 %v344_v40  ;;  %700 = vmatpush.msra.mxu3 %v285_v3  ;;  %v322_v40 = vld [vmem:[#allocation5 + $0x138] sm:$0xff] }
  0x36   :  { %410 = vmatpush.msrb.mxu2 %v312_v39  ;;  %381 = vmatpush.msra.mxu1 %v284_v5  ;;  %v352_v39 = vld [vmem:[#allocation5 + $0x228] sm:$0xff] }
  0x37   :  { %493 = vmatpush.msrb.mxu0 %v343_v44  ;;  %701 = vmatpush.msra.mxu3 %v284_v5  ;;  %v320_v44 = vld [vmem:[#allocation5 + $0x128] sm:$0xff] }
  0x38   :  { %411 = vmatpush.msrb.mxu2 %v311_v43  ;;  %382 = vmatpush.msra.mxu1 %v283_v8  ;;  %v350_v43 = vld [vmem:[#allocation5 + $0x218] sm:$0xff] }
  0x39   :  { %494 = vmatpush.msrb.mxu0 %v342_v48  ;;  %702 = vmatpush.msra.mxu3 %v283_v8  ;;  %v318_v48 = vld [vmem:[#allocation5 + $0x118] sm:$0xff] }
  0x3a   :  { %412 = vmatpush.msrb.mxu2 %v310_v47  ;;  %531 = vmatpush.msrb.mxu1 %v362_v11  ;;  %v348_v47 = vld [vmem:[#allocation5 + $0x208] sm:$0xff] }
  0x3b   :  { %495 = vmatpush.msrb.mxu0 %v341_v53  ;;  %449 = vmatpush.msrb.mxu3 %v330_v20  ;;  %v315_v53 = vld [vmem:[#allocation5 + $0x100] sm:$0xff] }
  0x3c   :  { %413 = vmatpush.msrb.mxu2 %v309_v52  ;;  %532 = vmatpush.msrb.mxu1 %v361_v14  ;;  %v316_v52 = vld [vmem:[#allocation5 + $0x108] sm:$0xff] }
  0x3d   :  { %496 = vmatpush.msrb.mxu0 %v340_v56  ;;  %450 = vmatpush.msrb.mxu3 %v329_v24 }
  0x3e   :  { %414 = vmatpush.msrb.mxu2 %v308_v55  ;;  %533 = vmatpush.msrb.mxu1 %v360_v17 }
  0x3f   :  { %497 = vmatpush.msrb.mxu0 %v339_v60  ;;  %451 = vmatpush.msrb.mxu3 %v328_v27 }
  0x40   :  { %415 = vmatpush.msrb.mxu2 %v307_v59  ;;  %534 = vmatpush.msrb.mxu1 %v359_v21 }
  0x41   :  { %498 = vmatpush.msrb.mxu0 %v338_v1  ;;  %452 = vmatpush.msrb.mxu3 %v327_v30 }
  0x42   :  { %416 = vmatpush.msrb.mxu2 %v306_v62  ;;  %535 = vmatpush.msrb.mxu1 %v358_v25 }
  0x43   :  { %499 = vmatpush.msrb.mxu0 %v337_v4 }
  0x44   :  { %417 = vmatpush.msrb.mxu2 %v305_v2  ;;  %536 = vmatpush.msrb.mxu1 %v357_v29 }
  0x45   :  { %500 = vmatpush.msrb.mxu0 %v336_v10 }
  0x46   :  { %418 = vmatpush.msrb.mxu2 %v304_v9  ;;  %537 = vmatpush.msrb.mxu1 %v356_v31 }
  0x47   :  { %501 = vmatpush.msrb.mxu0 %v335_v13 }
  0x48   :  { %419 = vmatpush.msrb.mxu2 %v303_v12  ;;  %538 = vmatpush.msrb.mxu1 %v355_v33 }
  0x49   :  { %502 = vmatpush.msrb.mxu0 %v334_v16 }
  0x4a   :  { %420 = vmatpush.msrb.mxu2 %v302_v15  ;;  %539 = vmatpush.msrb.mxu1 %v354_v35 }
  0x4b   :  { %503 = vmatpush.msrb.mxu0 %v333_v19 }
  0x4c   :  { %421 = vmatpush.msrb.mxu2 %v301_v18 }
  0x4d   :  { %504 = vmatpush.msrb.mxu0 %v332_v23 }
  0x4e   :  { %422 = vmatpush.msrb.mxu2 %v300_v22 }
  0x4f   :  { %505 = vmatpush.msrb.mxu0 %v331_v28 }
  0x50   :  { %423 = vmatpush.msrb.mxu2 %v299_v26 }
  0x6a   :  { %v75_v45 = vpop.permute.xlu2 %74 }
  0x6b   :  { %vm95_vm2 = vcmp.eq.s32.totalorder %v75_v45, %v846_v32  ;;  %v349_v45 = vld [vmem:[#allocation5 + $0x210] sm:$0xff] }
  0x73   :  { %v93_v6 = vpop.permute.xlu2 %92 }
  0x74   :  { %vm101_vm6 = vcmp.eq.s32.totalorder %v93_v6, %v846_v32 }
  0x81   :  { %v84_v36 = vpop.permute.xlu0 %83 }
  0x82   :  { %v72_v37 = vpop.permute.xlu1 %71  ;;  %vm98_vm0 = vcmp.eq.s32.totalorder %v84_v36, %v846_v32  ;;  %v324_v36 = vld [vmem:[#allocation5 + $0x148] sm:$0xff] }
  0x83   :  { %vm94_vm1 = vcmp.eq.s32.totalorder %v72_v37, %v846_v32  ;;  %663 = vmatmul.msk.f32.vlgmr.msra.gmra.mxu2 %vm98_vm0, %v772_v41  ;;  %v353_v37 = vld [vmem:[#allocation5 + $0x230] sm:$0xff] }
  0x84   :  { %659 = vmatmul.msk.f32.vlgmr.msra.gmra.mxu0 %vm94_vm1, %v772_v41  ;;  %540 = vmatpush.msrb.mxu1 %v353_v37 }
  0x86   :  { %541 = vmatpush.msrb.mxu1 %v352_v39 }
  0x89   :  { %v87_v50 = vpop.permute.xlu0 %86 }
  0x8a   :  { %vm99_vm3 = vcmp.eq.s32.totalorder %v87_v50, %v846_v32  ;;  %v90_v57 = vpop.permute.xlu1 %89  ;;  %v317_v50 = vld [vmem:[#allocation5 + $0x110] sm:$0xff] }
  0x8b   :  { %664 = vmatmul.msk.f32.gmra.mxu2 %vm99_vm3, %v772_v41  ;;  %vm100_vm4 = vcmp.eq.s32.totalorder %v90_v57, %v846_v32 }
  0x8c   :  { %660 = vmatmul.msk.f32.gmra.mxu0 %vm95_vm2, %v772_v41 }
  0x91   :  { %v78_v63 = vpop.permute.xlu0 %77 }
  0x92   :  { %vm96_vm5 = vcmp.eq.s32.totalorder %v78_v63, %v846_v32  ;;  %v81_v7 = vpop.permute.xlu1 %80 }
  0x93   :  { %665 = vmatmul.msk.f32.gmra.mxu2 %vm100_vm4, %v772_v41  ;;  %vm97_vm7 = vcmp.eq.s32.totalorder %v81_v7, %v846_v32  ;;  %v326_v32 = vld [vmem:[#allocation5 + $0x158] sm:$0xff] }
  0x94   :  { %661 = vmatmul.msk.f32.gmra.mxu0 %vm96_vm5, %v772_v41  ;;  %453 = vmatpush.msrb.mxu3 %v326_v32 }
  0x96   :  { %454 = vmatpush.msrb.mxu3 %v325_v34 }
  0x98   :  { %455 = vmatpush.msrb.mxu3 %v324_v36 }
  0x9a   :  { %456 = vmatpush.msrb.mxu3 %v323_v38 }
  0x9b   :  { %666 = vmatmul.msk.f32.gmra.mxu2 %vm101_vm6, %v772_v41 }
  0x9c   :  { %662 = vmatmul.msk.f32.gmra.mxu0 %vm97_vm7, %v772_v41  ;;  %v351_v41 = vld [vmem:[#allocation5 + $0x220] sm:$0xff]  ;;  %457 = vmatpush.msrb.mxu3 %v322_v40 }
  0x9d   :  { %542 = vmatpush.msrb.mxu1 %v351_v41 }
  0x9e   :  { %458 = vmatpush.msrb.mxu3 %v321_v42 }
  0x9f   :  { %543 = vmatpush.msrb.mxu1 %v350_v43 }
  0xa0   :  { %459 = vmatpush.msrb.mxu3 %v320_v44 }
  0xa1   :  { %544 = vmatpush.msrb.mxu1 %v349_v45 }
  0xa2   :  { %460 = vmatpush.msrb.mxu3 %v319_v46 }
  0xa3   :  { %545 = vmatpush.msrb.mxu1 %v348_v47 }
  0xa4   :  { %461 = vmatpush.msrb.mxu3 %v318_v48 }
  0xa5   :  { %546 = vmatpush.msrb.mxu1 %v347_v49 }
  0xa6   :  { %462 = vmatpush.msrb.mxu3 %v317_v50 }
  0xa8   :  { %463 = vmatpush.msrb.mxu3 %v316_v52 }
  0xaa   :  { %464 = vmatpush.msrb.mxu3 %v315_v53 }
 0x101   :  { %v151_v51 = vpop.f32.mrf.mxu0 }
 0x102   :  { %383 = vmatmul.f32.vlgmr.msra.gmra.mxu1 %v151_v51  ;;  %v184_v55 = vrot.slane %v151_v51, 1  ;;  %v234_v56 = vrot.slane %v151_v51, 3  ;;  %v259_v10 = vrot.slane %v151_v51, 4  ;;  %v209_v16 = vrot.slane %v151_v51, 2 }
 0x106   :  { %v864_v54 = vpop.f32.mrf.mxu2 }
 0x107   :  { %395 = vmatmul.f32.vlgmr.msra.gmra.mxu3 %v864_v54  ;;  %v191_v14 = vrot.slane %v864_v54, 1  ;;  %v241_v15 = vrot.slane %v864_v54, 3  ;;  %v266_v37 = vrot.slane %v864_v54, 4  ;;  %v216_v43 = vrot.slane %v864_v54, 2 }
 0x109   :  { %v154_v57 = vpop.f32.mrf.mxu0 }
 0x10a   :  { %386 = vmatmul.f32.gmra.mxu1 %v154_v57  ;;  %v185_v58 = vrot.slane %v154_v57, 1  ;;  %v235_v59 = vrot.slane %v154_v57, 3  ;;  %v260_v11 = vrot.slane %v154_v57, 4  ;;  %v210_v17 = vrot.slane %v154_v57, 2 }
 0x10c   :  { %v186_v60 = vsel %vm183_vm8, %v184_v55, %v185_v58  ;;  %v236_v61 = vsel %vm233_vm9, %v234_v56, %v235_v59  ;;  %v261_v13 = vsel %vm258_vm10, %v259_v10, %v260_v11  ;;  %v211_v21 = vsel %vm208_vm11, %v209_v16, %v210_v17 }
 0x10d   :  { %424 = vmatmul.f32.vlgmr.msrb.gmra.mxu2 %v186_v60  ;;  %506 = vmatmul.f32.vlgmr.msrb.gmra.mxu0 %v236_v61 }
 0x10e   :  { %v869_v62 = vpop.f32.mrf.mxu2 }
 0x10f   :  { %398 = vmatmul.f32.gmra.mxu3 %v869_v62  ;;  %v193_v22 = vrot.slane %v869_v62, 1  ;;  %v243_v23 = vrot.slane %v869_v62, 3  ;;  %v268_v44 = vrot.slane %v869_v62, 4  ;;  %v218_v47 = vrot.slane %v869_v62, 2 }
 0x111   :  { %v157_v63 = vpop.f32.mrf.mxu0  ;;  %v194_v26 = vsel %vm183_vm8, %v191_v14, %v193_v22  ;;  %v244_v27 = vsel %vm233_vm9, %v241_v15, %v243_v23  ;;  %v269_v46 = vsel %vm258_vm10, %v266_v37, %v268_v44  ;;  %v219_v49 = vsel %vm208_vm11, %v216_v43, %v218_v47 }
 0x112   :  { %389 = vmatmul.f32.gmra.mxu1 %v157_v63  ;;  %v187_v0 = vrot.slane %v157_v63, 1  ;;  %v237_v1 = vrot.slane %v157_v63, 3  ;;  %v262_v20 = vrot.slane %v157_v63, 4  ;;  %v212_v25 = vrot.slane %v157_v63, 2 }
 0x114   :  { %v188_v2 = vsel %vm183_vm8, %v185_v58, %v187_v0  ;;  %v238_v3 = vsel %vm233_vm9, %v235_v59, %v237_v1  ;;  %v263_v24 = vsel %vm258_vm10, %v260_v11, %v262_v20  ;;  %v213_v29 = vsel %vm208_vm11, %v210_v17, %v212_v25 }
 0x115   :  { %427 = vmatmul.f32.gmra.mxu2 %v188_v2  ;;  %509 = vmatmul.f32.gmra.mxu0 %v238_v3 }
 0x116   :  { %v874_v4 = vpop.f32.mrf.mxu2 }
 0x117   :  { %401 = vmatmul.f32.gmra.mxu3 %v874_v4  ;;  %v195_v30 = vrot.slane %v874_v4, 1  ;;  %v245_v31 = vrot.slane %v874_v4, 3  ;;  %v270_v48 = vrot.slane %v874_v4, 4  ;;  %v220_v51 = vrot.slane %v874_v4, 2 }
 0x119   :  { %v877_v5 = vpop.f32.mrf.mxu0  ;;  %v196_v34 = vsel %vm183_vm8, %v193_v22, %v195_v30  ;;  %v246_v35 = vsel %vm233_vm9, %v243_v23, %v245_v31  ;;  %v271_v50 = vsel %vm258_vm10, %v268_v44, %v270_v48  ;;  %v221_v53 = vsel %vm208_vm11, %v218_v47, %v220_v51 }
 0x11a   :  { %392 = vmatmul.f32.gmra.mxu1 %v877_v5  ;;  %v189_v6 = vrot.slane %v877_v5, 1  ;;  %v239_v7 = vrot.slane %v877_v5, 3  ;;  %v264_v28 = vrot.slane %v877_v5, 4  ;;  %v214_v33 = vrot.slane %v877_v5, 2  ;;  %v940_v5 = vld [vmem:[%s987_s3] ss:$0 sm:$0xff] }
 0x11c   :  { %v190_v8 = vsel %vm183_vm8, %v187_v0, %v189_v6  ;;  %v240_v9 = vsel %vm233_vm9, %v237_v1, %v239_v7  ;;  %v192_v18 = vsel %vm183_vm8, %v189_v6, %v191_v14  ;;  %v242_v19 = vsel %vm233_vm9, %v239_v7, %v241_v15 }
 0x11d   :  { %430 = vmatmul.f32.gmra.mxu2 %v190_v8  ;;  %512 = vmatmul.f32.gmra.mxu0 %v240_v9  ;;  %v265_v32 = vsel %vm258_vm10, %v262_v20, %v264_v28  ;;  %v215_v36 = vsel %vm208_vm11, %v212_v25, %v214_v33  ;;  %v267_v40 = vsel %vm258_vm10, %v264_v28, %v266_v37 }
 0x11e   :  { %v884_v12 = vpop.f32.mrf.mxu2  ;;  %v217_v45 = vsel %vm208_vm11, %v214_v33, %v216_v43 }
 0x11f   :  { %404 = vmatmul.f32.gmra.mxu3 %v884_v12  ;;  %v197_v38 = vrot.slane %v884_v12, 1  ;;  %v247_v39 = vrot.slane %v884_v12, 3  ;;  %v272_v52 = vrot.slane %v884_v12, 4  ;;  %v222_v55 = vrot.slane %v884_v12, 2 }
 0x121   :  { %v198_v41 = vsel %vm183_vm8, %v195_v30, %v197_v38  ;;  %v248_v42 = vsel %vm233_vm9, %v245_v31, %v247_v39  ;;  %v273_v54 = vsel %vm258_vm10, %v270_v48, %v272_v52  ;;  %v223_v56 = vsel %vm208_vm11, %v220_v51, %v222_v55 }
 0x122   :  { %547 = vmatmul.f32.vlgmr.msrb.gmra.mxu1 %v261_v13 }
 0x125   :  { %433 = vmatmul.f32.gmra.mxu2 %v192_v18  ;;  %515 = vmatmul.f32.gmra.mxu0 %v242_v19 }
 0x127   :  { %465 = vmatmul.f32.vlgmr.msrb.gmra.mxu3 %v211_v21 }
 0x12a   :  { %550 = vmatmul.f32.gmra.mxu1 %v263_v24 }
 0x12d   :  { %436 = vmatmul.f32.gmra.mxu2 %v194_v26  ;;  %518 = vmatmul.f32.gmra.mxu0 %v244_v27  ;;  %v580_v26 = vld [vmem:[%s988_s4] sm:$0xff]  ;;  %v581_v27 = vld [vmem:[%s988_s4 + $0x8] sm:$0xff] }
 0x12f   :  { %468 = vmatmul.f32.gmra.mxu3 %v213_v29 }
 0x132   :  { %553 = vmatmul.f32.gmra.mxu1 %v265_v32 }
 0x135   :  { %439 = vmatmul.f32.gmra.mxu2 %v196_v34  ;;  %521 = vmatmul.f32.gmra.mxu0 %v246_v35 }
 0x137   :  { %471 = vmatmul.f32.gmra.mxu3 %v215_v36 }
 0x13a   :  { %556 = vmatmul.f32.gmra.mxu1 %v267_v40 }
 0x13d   :  { %442 = vmatmul.f32.gmra.mxu2 %v198_v41  ;;  %524 = vmatmul.f32.gmra.mxu0 %v248_v42 }
 0x13f   :  { %474 = vmatmul.f32.gmra.mxu3 %v217_v45 }
 0x142   :  { %559 = vmatmul.f32.gmra.mxu1 %v269_v46 }
 0x145   :  { %667 = vmatmul.msk.f32.gmra.mxu2 %vm183_vm8, %v197_v38  ;;  %669 = vmatmul.msk.f32.gmra.mxu0 %vm233_vm9, %v247_v39 }
 0x147   :  { %477 = vmatmul.f32.gmra.mxu3 %v219_v49 }
 0x14a   :  { %562 = vmatmul.f32.gmra.mxu1 %v271_v50  ;;  %v583_v50 = vld [vmem:[%s988_s4 + $0x18] sm:$0xff] }
 0x14f   :  { %480 = vmatmul.f32.gmra.mxu3 %v221_v53 }
 0x152   :  { %565 = vmatmul.f32.gmra.mxu1 %v273_v54 }
 0x157   :  { %483 = vmatmul.f32.gmra.mxu3 %v223_v56 }
 0x15a   :  { %670 = vmatmul.msk.f32.gmra.mxu1 %vm258_vm10, %v272_v52  ;;  %v582_v52 = vld [vmem:[%s988_s4 + $0x10] sm:$0xff] }
 0x15f   :  { %668 = vmatmul.msk.f32.gmra.mxu3 %vm208_vm11, %v222_v55 }
 0x17f   :  { %v384_v57 = vpop.f32.mrf.mxu1 }
 0x180   :  { %v385_v6 = vadd.f32 %v940_v5, %v384_v57 }
 0x187   :  { %v387_v58 = vpop.f32.mrf.mxu1 }
 0x188   :  { %v388_v13 = vadd.f32 %v940_v5, %v387_v58 }
 0x18a   :  { %v396_v59 = vpop.f32.mrf.mxu3  ;;  %v507_v1 = vpop.f32.mrf.mxu0 }
 0x18b   :  { %v397_v46 = vadd.f32 %v940_v5, %v396_v59 }
 0x18f   :  { %v390_v60 = vpop.f32.mrf.mxu1 }
 0x190   :  { %v425_v63 = vpop.f32.mrf.mxu2  ;;  %v391_v25 = vadd.f32 %v940_v5, %v390_v60 }
 0x191   :  { %v426_v8 = vadd.f32 %v425_v63, %v385_v6 }
 0x192   :  { %v931_v61 = vpop.f32.mrf.mxu3  ;;  %v510_v7 = vpop.f32.mrf.mxu0 }
 0x193   :  { %v400_v59 = vadd.f32 %v940_v5, %v931_v61  ;;  %v584_v61 = vld [vmem:[%s988_s4 + $0x20] sm:$0xff] }
 0x197   :  { %v393_v62 = vpop.f32.mrf.mxu1 }
 0x198   :  { %v428_v3 = vpop.f32.mrf.mxu2  ;;  %v394_v37 = vadd.f32 %v940_v5, %v393_v62 }
 0x199   :  { %v429_v15 = vadd.f32 %v428_v3, %v388_v13 }
 0x19a   :  { %v933_v0 = vpop.f32.mrf.mxu3  ;;  %v513_v16 = vpop.f32.mrf.mxu0 }
 0x19b   :  { %v403_v13 = vadd.f32 %v940_v5, %v933_v0 }
 0x19f   :  { %v548_v2 = vpop.f32.mrf.mxu1 }
 0x1a0   :  { %v431_v12 = vpop.f32.mrf.mxu2 }
 0x1a1   :  { %v432_v29 = vadd.f32 %v431_v12, %v391_v25 }
 0x1a2   :  { %v935_v4 = vpop.f32.mrf.mxu3  ;;  %v516_v33 = vpop.f32.mrf.mxu0 }
 0x1a7   :  { %v551_v9 = vpop.f32.mrf.mxu1 }
 0x1a8   :  { %v434_v22 = vpop.f32.mrf.mxu2 }
 0x1a9   :  { %v435_v40 = vadd.f32 %v434_v22, %v394_v37 }
 0x1aa   :  { %v466_v10 = vpop.f32.mrf.mxu3  ;;  %v519_v45 = vpop.f32.mrf.mxu0 }
 0x1ab   :  { %v467_v11 = vadd.f32 %v466_v10, %v426_v8 }
 0x1ad   :  { %v508_v14 = vadd.f32 %v507_v1, %v467_v11 }
 0x1af   :  { %v549_v18 = vadd.f32 %v548_v2, %v508_v14  ;;  %v554_v20 = vpop.f32.mrf.mxu1 }
 0x1b0   :  { %v437_v38 = vpop.f32.mrf.mxu2 }
 0x1b1   :  { %v572_v23 = vmax.f32 %v549_v18, 0.0  ;;  %v438_v51 = vadd.f32 %v437_v38, %v397_v46 }
 0x1b2   :  { %v469_v17 = vpop.f32.mrf.mxu3  ;;  %v522_v63 = vpop.f32.mrf.mxu0 }
 0x1b3   :  { %v470_v19 = vadd.f32 %v469_v17, %v429_v15  ;;  %v588_v31 = vmul.f32 %v580_v26, %v572_v23  ;;  %v585_v17 = vld [vmem:[%s988_s4 + $0x28] sm:$0xff] }
 0x1b5   :  { %v511_v21 = vadd.f32 %v510_v7, %v470_v19 }
 0x1b7   :  { %v552_v24 = vadd.f32 %v551_v9, %v511_v21  ;;  %v557_v36 = vpop.f32.mrf.mxu1 }
 0x1b8   :  { %v440_v54 = vpop.f32.mrf.mxu2 }
 0x1b9   :  { %v573_v28 = vmax.f32 %v552_v24, 0.0  ;;  %v441_v1 = vadd.f32 %v440_v54, %v400_v59 }
 0x1ba   :  { %v472_v30 = vpop.f32.mrf.mxu3 }
 0x1bb   :  { %v589_v32 = vmul.f32 %v581_v27, %v573_v28  ;;  %v473_v34 = vadd.f32 %v472_v30, %v432_v29  ;;  %v406_v30 = vadd.f32 %v940_v5, %v935_v4  ;;  %v586_v4 = vld [vmem:[%s988_s4 + $0x30] sm:$0xff]  ;;  %v587_v5 = vld [vmem:[%s988_s4 + $0x38] sm:$0xff] }
 0x1bd   :  { %v596_v35 = vmax.f32 %v588_v31, %v589_v32  ;;  %v514_v39 = vadd.f32 %v513_v16, %v473_v34 }
 0x1bf   :  { %v555_v43 = vadd.f32 %v554_v20, %v514_v39  ;;  %v560_v49 = vpop.f32.mrf.mxu1  ;;  %v597_v9 = vrot.slane %v596_v35, 4  ;;  %v525_v20 = vpop.f32.mrf.mxu0 }
 0x1c0   :  { %v443_v10 = vpop.f32.mrf.mxu2 }
 0x1c1   :  { %v574_v48 = vmax.f32 %v555_v43, 0.0  ;;  %v598_v16 = vmax.f32 %v596_v35, %v597_v9  ;;  %v444_v18 = vadd.f32 %v443_v10, %v403_v13 }
 0x1c2   :  { %v475_v41 = vpop.f32.mrf.mxu3 }
 0x1c3   :  { %v476_v42 = vadd.f32 %v475_v41, %v435_v40  ;;  %v590_v58 = vmul.f32 %v582_v52, %v574_v48  ;;  %v599_v0 = vrot.slane %v598_v16, 2 }
 0x1c5   :  { %v517_v44 = vadd.f32 %v516_v33, %v476_v42  ;;  %v600_v33 = vmax.f32 %v598_v16, %v599_v0 }
 0x1c7   :  { %v558_v47 = vadd.f32 %v557_v36, %v517_v44  ;;  %v563_v3 = vpop.f32.mrf.mxu1  ;;  %v528_v41 = vpop.f32.mrf.mxu0  ;;  %v601_v42 = vrot.slane %v600_v33, 1 }
 0x1c8   :  { %v446_v29 = vpop.f32.mrf.mxu2 }
 0x1c9   :  { %v575_v53 = vmax.f32 %v558_v47, 0.0  ;;  %v447_v34 = vadd.f32 %v446_v29, %v406_v30 }
 0x1ca   :  { %v478_v55 = vpop.f32.mrf.mxu3 }
 0x1cb   :  { %v591_v56 = vmul.f32 %v583_v50, %v575_v53  ;;  %v479_v57 = vadd.f32 %v478_v55, %v438_v51  ;;  %v602_v50 = vmax.f32 %v600_v33, %v601_v42 }
 0x1cd   :  { %v603_v60 = vmax.f32 %v590_v58, %v591_v56  ;;  %v520_v62 = vadd.f32 %v519_v45, %v479_v57 }
 0x1cf   :  { %v604_v2 = vrot.slane %v603_v60, 4  ;;  %v561_v7 = vadd.f32 %v560_v49, %v520_v62  ;;  %v566_v26 = vpop.f32.mrf.mxu1 }
 0x1d1   :  { %v605_v12 = vmax.f32 %v603_v60, %v604_v2  ;;  %v576_v14 = vmax.f32 %v561_v7, 0.0 }
 0x1d2   :  { %v481_v6 = vpop.f32.mrf.mxu3 }
 0x1d3   :  { %v482_v8 = vadd.f32 %v481_v6, %v441_v1  ;;  %v606_v21 = vrot.slane %v605_v12, 2  ;;  %v592_v23 = vmul.f32 %v584_v61, %v576_v14  ;;  %v713_v1 = vld [vmem:[%s989_s5] ss:$0 sm:$0xff] }
 0x1d5   :  { %v523_v11 = vadd.f32 %v522_v63, %v482_v8  ;;  %v607_v28 = vmax.f32 %v605_v12, %v606_v21  ;;  %v714_v8 = vld [vmem:[#allocation2] ss:$0 sm:$0xff] }
 0x1d7   :  { %v564_v15 = vadd.f32 %v563_v3, %v523_v11  ;;  %v608_v37 = vrot.slane %v607_v28, 1  ;;  %v569_v45 = vpop.f32.mrf.mxu1 }
 0x1d9   :  { %v577_v19 = vmax.f32 %v564_v15, 0.0  ;;  %v609_v46 = vmax.f32 %v607_v28, %v608_v37 }
 0x1da   :  { %v484_v22 = vpop.f32.mrf.mxu3 }
 0x1db   :  { %v593_v24 = vmul.f32 %v585_v17, %v577_v19  ;;  %v485_v25 = vadd.f32 %v484_v22, %v444_v18  ;;  %v625_v53 = vsel %vm624_vm12, %v602_v50, %v609_v46 }
 0x1dd   :  { %v610_v27 = vmax.f32 %v592_v23, %v593_v24  ;;  %v526_v32 = vadd.f32 %v525_v20, %v485_v25 }
 0x1df   :  { %v611_v31 = vrot.slane %v610_v27, 4  ;;  %v567_v39 = vadd.f32 %v566_v26, %v526_v32 }
 0x1e1   :  { %v612_v35 = vmax.f32 %v610_v27, %v611_v31  ;;  %v578_v47 = vmax.f32 %v567_v39, 0.0 }
 0x1e2   :  { %v487_v36 = vpop.f32.mrf.mxu3 }
 0x1e3   :  { %v613_v38 = vrot.slane %v612_v35, 2  ;;  %v488_v40 = vadd.f32 %v487_v36, %v447_v34  ;;  %v594_v54 = vmul.f32 %v586_v4, %v578_v47 }
 0x1e5   :  { %v529_v43 = vadd.f32 %v528_v41, %v488_v40  ;;  %v614_v44 = vmax.f32 %v612_v35, %v613_v38 }
 0x1e7   :  { %v570_v48 = vadd.f32 %v569_v45, %v529_v43  ;;  %v615_v49 = vrot.slane %v614_v44, 1 }
 0x1e9   :  { %v579_v51 = vmax.f32 %v570_v48, 0.0  ;;  %v616_v52 = vmax.f32 %v614_v44, %v615_v49 }
 0x1eb   :  { %v595_v55 = vmul.f32 %v587_v5, %v579_v51  ;;  %v627_v56 = vsel %vm626_vm13, %v625_v53, %v616_v52 }
 0x1ed   :  { %v617_v57 = vmax.f32 %v594_v54, %v595_v55 }
 0x1ef   :  { %v618_v58 = vrot.slane %v617_v57, 4 }
 0x1f1   :  { %v619_v60 = vmax.f32 %v617_v57, %v618_v58 }
 0x1f3   :  { %v620_v59 = vrot.slane %v619_v60, 2 }
 0x1f5   :  { %v621_v62 = vmax.f32 %v619_v60, %v620_v59 }
 0x1f7   :  { %v622_v63 = vrot.slane %v621_v62, 1 }
 0x1f9   :  { %v623_v2 = vmax.f32 %v621_v62, %v622_v63 }
 0x1fb   :  { %v629_v3 = vsel %vm628_vm14, %v627_v56, %v623_v2 }
 0x1fc   :  { %v634_v6 = vmul.f32 %v713_v1, %v629_v3 }
 0x1fe   :  { %v635_v7 = vsel %vm258_vm10, %v634_v6, 0.0 }
 0x1ff   :  { %636 = vadd.xlane.f32.xlu2 %v635_v7 }
 0x272   :  { %v637_v9 = vpop.xlane.xlu2 %636 }
 0x273   :  { %v642_v10 = vadd.f32 %v714_v8, %v637_v9 }
 0x275   :  { %644 = vst.msk [vmem:[%s991_s7] sm:$0xf] %vm643_vm15, %v642_v10 }
 0x276   :  { %649 = vsyncpa [#allocation4], 1 }
 0x277   :  { %650 = vsyncpa [#allocation6], 1 }

</bundles_post_ra>
